<compile_context>
chip_gen: v6e
topology: v6e:2x2x1
jax: 0.10.0
libtpu: 0.0.40
codegen_flags: <defaults>
</compile_context>

<pallas_src>
import functools

import jax
import jax.numpy as jnp
from jax.experimental import pallas as pl
from jax.experimental.pallas import tpu as pltpu

PERTERB = 1e-15


def _round_up(x, m):
    return ((x + m - 1) // m) * m


def _scores_kernel(key_ref, query_ref, scores_ref, sumsq_ref):
    """One grid step: raw scores for one S-tile + running sum(key^2)."""
    si = pl.program_id(0)

    @pl.when(si == 0)
    def _init():
        sumsq_ref[...] = jnp.zeros_like(sumsq_ref)

    k = key_ref[...]                       # (B, s_tile, D), native dtype
    q = query_ref[...]                     # (B, 1, D),      native dtype

    # Batched mat-vec on the MXU (contract D), f32 accumulation:
    #   scores[b, 0, s] = sum_d q[b, 0, d] * k[b, s, d]
    scores_ref[...] = jax.lax.dot_general(
        q, k,
        dimension_numbers=(((2,), (2,)), ((0,), (0,))),
        preferred_element_type=jnp.float32)      # (B, 1, s_tile)

    # Running Frobenius-norm accumulator in f32. The astype is a no-op for
    # f32 inputs; for bf16 inputs only this squared-sum path upcasts.
    kf = k.astype(jnp.float32)
    sumsq_ref[...] += jnp.sum(kf * kf)


def _softmax_kernel(scores_ref, sumsq_ref, out_ref, *, valid_s):
    """Epilogue: scale by 1/||key||_F, masked softmax over S, + perturb."""
    scores = scores_ref[...]                           # (B, 1, S_pad) f32
    denom = jnp.sqrt(sumsq_ref[0, 0])
    scaled = scores * pl.reciprocal(denom, approx=False)

    s_pad = scores.shape[-1]
    if valid_s < s_pad:                                # mask zero-padded tail
        col = jax.lax.broadcasted_iota(jnp.int32, scores.shape, 2)
        scaled = jnp.where(col < valid_s, scaled, -1e30)

    m = jnp.max(scaled, axis=2, keepdims=True)
    e = jnp.exp(scaled - m)
    ssum = jnp.sum(e, axis=2, keepdims=True)
    out = e * pl.reciprocal(ssum, approx=True) + PERTERB
    out_ref[...] = out.astype(out_ref.dtype)


def attention_forward(key, query, *, s_tile=None):
    """key: (B, S, D), query: (B, D) -> (B, S, 1) float32."""
    B, S, D = key.shape
    assert query.shape == (B, D)
    itemsize = jnp.dtype(key.dtype).itemsize

    # ---- tile sizing (generation-aware) ------------------------------------
    if s_tile is None:
        if S <= 512:
            s_tile = _round_up(S, 8)          # single tile, sublane aligned
        else:
            # >=512 rows for near-roofline DMA; keep 2x (double-buffered) key
            # blocks <= ~8 MiB so we stay far below v5e's 16 MiB scoped
            # default and v7x's 64 MiB physical VMEM.  Floor of 128 keeps the
            # lane-dense score blocks 128-aligned when the grid has >1 step.
            s_tile = 512
            while s_tile > 128 and 2 * B * s_tile * D * itemsize > (8 << 20):
                s_tile //= 2

    s_pad = _round_up(S, s_tile)
    if s_pad != S:
        # Zero rows do not perturb the Frobenius norm; their scores are
        # masked out of the softmax in the epilogue and sliced off below.
        key = jnp.pad(key, ((0, 0), (0, s_pad - S), (0, 0)))
    ns = s_pad // s_tile

    q3 = query.reshape(B, 1, D)

    # ---- pass 1: stream key from HBM exactly once --------------------------
    scores, sumsq = pl.pallas_call(
        _scores_kernel,
        out_shape=(
            jax.ShapeDtypeStruct((B, 1, s_pad), jnp.float32),
            jax.ShapeDtypeStruct((1, 1), jnp.float32),
        ),
        grid_spec=pltpu.PrefetchScalarGridSpec(
            num_scalar_prefetch=0,
            grid=(ns,),
            in_specs=[
                pl.BlockSpec((B, s_tile, D), lambda si: (0, si, 0)),
                pl.BlockSpec((B, 1, D), lambda si: (0, 0, 0)),
            ],
            out_specs=[
                pl.BlockSpec((B, 1, s_tile), lambda si: (0, 0, si)),
                pl.BlockSpec((1, 1), lambda si: (0, 0)),
            ],
        ),
        compiler_params=pltpu.CompilerParams(
            # The single grid axis carries the global-norm reduction.
            # TODO(synk): v7x megacore would need per-core partial norms and a
            # combine step before this axis could be marked "parallel".
            dimension_semantics=("arbitrary",),
            vmem_limit_bytes=32 * 1024 * 1024,
        ),
    )(key, q3)

    # ---- pass 2: tiny softmax epilogue on the (B, 1, S_pad) scores ---------
    out_pad = pl.pallas_call(
        functools.partial(_softmax_kernel, valid_s=S),
        out_shape=jax.ShapeDtypeStruct((B, 1, s_pad), jnp.float32),
        in_specs=[
            pl.BlockSpec(memory_space=pltpu.MemorySpace.VMEM),
            pl.BlockSpec(memory_space=pltpu.MemorySpace.VMEM),
        ],
        out_specs=pl.BlockSpec(memory_space=pltpu.MemorySpace.VMEM),
    )(scores, sumsq)

    return out_pad[:, 0, :S].reshape(B, S, 1)


# TODO(synk): the seq_lens masking branch of the torch module is not ported —
# it references an undefined `value` tensor in the original code; only the
# seq_lens=None path is implemented.


def _reference(key, query):
    key = key.astype(jnp.float32)
    query = query.astype(jnp.float32)
    scores = jnp.einsum("bsd,bd->bs", key, query)
    denom = jnp.sqrt(jnp.sum(key * key))
    sm = jax.nn.softmax(scores / denom, axis=1)
    return (sm + PERTERB)[..., None]


if __name__ == "__main__":
    B, S, D = 2, 8, 32
    rng = jax.random.PRNGKey(0)
    k_key, k_query = jax.random.split(rng)
    key = jax.random.normal(k_key, (B, S, D), dtype=jnp.float32)
    query = jax.random.normal(k_query, (B, D), dtype=jnp.float32)

    out = attention_forward(key, query)
    out = jax.block_until_ready(out)

    ref = _reference(key, query)
    assert out.shape == (B, S, 1)
    # Tolerance covers the EUP approx-reciprocal in the softmax epilogue and
    # MXU accumulation-order differences.
    assert jnp.allclose(out, ref, atol=2e-3, rtol=2e-3), float(
        jnp.max(jnp.abs(out - ref)))

    print("KERNEL_OK")
</pallas_src>

<mosaic_0001>
module attributes {stable_mosaic.version = 11 : i64} {
  func.func @_scores_kernel(%arg0: i32, %arg1: memref<2x8x32xf32, #tpu.memory_space<vmem>>, %arg2: memref<2x1x32xf32, #tpu.memory_space<vmem>>, %arg3: memref<2x1x8xf32, #tpu.memory_space<vmem>>, %arg4: memref<1x1xf32, #tpu.memory_space<vmem>>) attributes {dimension_semantics = [#tpu.dimension_semantics<arbitrary>], iteration_bounds = array<i64: 1>, scalar_prefetch = 0 : i64, scratch_operands = 0 : i64, tpu.core_type = #tpu.core_type<tc>, window_params = [{transform_indices = @transform_0, window_bounds = array<i64: 2, 8, 32>}, {pipeline_mode = #tpu.pipeline_mode<synchronous>, transform_indices = @transform_1, window_bounds = array<i64: 2, 1, 32>}, {transform_indices = @transform_2, window_bounds = array<i64: 2, 1, 8>}, {pipeline_mode = #tpu.pipeline_mode<synchronous>, transform_indices = @transform_3, window_bounds = array<i64: 1, 1>}]} {
    %c0_i32 = arith.constant 0 : i32
    %0 = arith.cmpi eq, %arg0, %c0_i32 : i32
    %1 = arith.extui %0 : i1 to i32
    %c0_i32_0 = arith.constant 0 : i32
    %2 = arith.cmpi ne, %1, %c0_i32_0 : i32
    scf.if %2 {
      %cst_14 = arith.constant 0.000000e+00 : f32
      %16 = vector.broadcast %cst_14 : f32 to vector<1x1xf32>
      %c0_15 = arith.constant 0 : index
      %c0_16 = arith.constant 0 : index
      %17 = vector.load %arg4[%c0_15, %c0_16] : memref<1x1xf32, #tpu.memory_space<vmem>>, vector<1x1xf32>
      tpu.vector_store %arg4[%c0_15, %c0_16], %16 {strides = array<i32>} : memref<1x1xf32, #tpu.memory_space<vmem>>, vector<1x1xf32>,
    } else {
    }
    %c0 = arith.constant 0 : index
    %c0_1 = arith.constant 0 : index
    %c0_2 = arith.constant 0 : index
    %3 = vector.load %arg1[%c0, %c0_1, %c0_2] : memref<2x8x32xf32, #tpu.memory_space<vmem>>, vector<2x8x32xf32>
    %c0_3 = arith.constant 0 : index
    %c0_4 = arith.constant 0 : index
    %c0_5 = arith.constant 0 : index
    %4 = vector.load %arg2[%c0_3, %c0_4, %c0_5] : memref<2x1x32xf32, #tpu.memory_space<vmem>>, vector<2x1x32xf32>
    %cst = arith.constant dense<0.000000e+00> : vector<2x1x8xf32>
    %5 = tpu.matmul %4, %3, %cst {dimension_numbers = #tpu.dot_dimension_numbers<[2], [2], [1], [1], [0, 0, 0, 1, 1, 1], [0], [0]>} : vector<2x1x32xf32>, vector<2x8x32xf32>, vector<2x1x8xf32> -> vector<2x1x8xf32>
    %c0_6 = arith.constant 0 : index
    %c0_7 = arith.constant 0 : index
    %c0_8 = arith.constant 0 : index
    %6 = vector.load %arg3[%c0_6, %c0_7, %c0_8] : memref<2x1x8xf32, #tpu.memory_space<vmem>>, vector<2x1x8xf32>
    tpu.vector_store %arg3[%c0_6, %c0_7, %c0_8], %5 {strides = array<i32>} : memref<2x1x8xf32, #tpu.memory_space<vmem>>, vector<2x1x8xf32>,
    %c0_9 = arith.constant 0 : index
    %c0_10 = arith.constant 0 : index
    %7 = vector.load %arg4[%c0_9, %c0_10] : memref<1x1xf32, #tpu.memory_space<vmem>>, vector<1x1xf32>
    %8 = arith.mulf %3, %3 : vector<2x8x32xf32>
    %9 = vector.shape_cast %8 : vector<2x8x32xf32> to vector<1x2x8x32xf32>
    %cst_11 = arith.constant dense<0.000000e+00> : vector<1xf32>
    %10 = vector.multi_reduction <add>, %9, %cst_11 [1, 2, 3] : vector<1x2x8x32xf32> to vector<1xf32>
    %11 = vector.shape_cast %10 : vector<1xf32> to vector<1x1x1x1xf32>
    %12 = vector.extract %11[0, 0, 0, 0] : f32 from vector<1x1x1x1xf32>
    %13 = vector.broadcast %12 : f32 to vector<1x1xf32>
    %14 = arith.addf %7, %13 : vector<1x1xf32>
    %c0_12 = arith.constant 0 : index
    %c0_13 = arith.constant 0 : index
    %15 = vector.load %arg4[%c0_12, %c0_13] : memref<1x1xf32, #tpu.memory_space<vmem>>, vector<1x1xf32>
    tpu.vector_store %arg4[%c0_12, %c0_13], %14 {strides = array<i32>} : memref<1x1xf32, #tpu.memory_space<vmem>>, vector<1x1xf32>,
    return
  }
  func.func @transform_0(%arg0: i32) -> (i32, i32, i32) {
    %c0_i32 = arith.constant 0 : i32
    %c0_i32_0 = arith.constant 0 : i32
    %c0_i32_1 = arith.constant 0 : i32
    return %c0_i32, %arg0, %c0_i32_0 : i32, i32, i32
  }
  func.func @transform_1(%arg0: i32) -> (i32, i32, i32) {
    %c0_i32 = arith.constant 0 : i32
    %c0_i32_0 = arith.constant 0 : i32
    %c0_i32_1 = arith.constant 0 : i32
    %c0_i32_2 = arith.constant 0 : i32
    return %c0_i32, %c0_i32_0, %c0_i32_1 : i32, i32, i32
  }
  func.func @transform_2(%arg0: i32) -> (i32, i32, i32) {
    %c0_i32 = arith.constant 0 : i32
    %c0_i32_0 = arith.constant 0 : i32
    %c0_i32_1 = arith.constant 0 : i32
    return %c0_i32, %c0_i32_0, %arg0 : i32, i32, i32
  }
  func.func @transform_3(%arg0: i32) -> (i32, i32) {
    %c0_i32 = arith.constant 0 : i32
    %c0_i32_0 = arith.constant 0 : i32
    %c0_i32_1 = arith.constant 0 : i32
    return %c0_i32, %c0_i32_0 : i32, i32
  }
}

</mosaic_0001>

<bundles_post_ra>
// kernel: tpu_custom_call.1
= control target key start
LH: loop header
LB: loop body
LE: loop exit
PB: predicated region body
PF: predicated region fallthrough
CT: control target
= control target key end

     0   :  { %9 = vsyncpa [#allocation3], 0  ;;  %s428_s0 = inlined_call_operand.hbm [shape: f32[2,8,32], index: 0, kind: input, shape index: {}]   ;;  %s429_s1 = inlined_call_operand.hbm [shape: f32[2,1,32], index: 1, kind: input, shape index: {}]   ;;  %s430_s2 = inlined_call_operand.hbm [shape: f32[2,1,8], index: 2, kind: output, shape index: {0}]   ;;  %s431_s3 = inlined_call_operand.hbm [shape: f32[1,1], index: 3, kind: output, shape index: {1}]  }
   0x1   :  { %10 = vsyncpa [#allocation6], 0 }
   0x2   :  { %11 = vsyncpa [#allocation4], 0 }
   0x3   :  { %12 = vsyncpa [#allocation9], 0  ;;  %s378_s12 = smov [#allocation2]  }
   0x4   :  { %s18_s13 = sshll.u32 %s378_s12, 4  ;;  %s19_s13 = int_to_ptr.vmem [resolvable:$true] %s18_s13 }
   0x5   :  { %s298_s14 = scalar_lea.vmem %s19_s13, 256  ;;  %p303_p1 = scmp.lt.s32.totalorder %s19_s13, %s19_s13 }
   0x6   :  { %p299_p0 = scmp.ne.s32.totalorder %s19_s13, %s298_s14  ;;  %p304_p2 = scmp.lt.s32.totalorder %s298_s14, %s298_s14 }
   0x8   :  { %p305_p3 = por %p304_p2, %p303_p1 }
   0xa   :  { %p306_p4 = pnand %p305_p3, %p299_p0 }
   0xc   :  { %309 = shalt.err (!%p306_p4)
}
   0xd   :  { %s379_s15 = smov 128   ;;  %s380_s16 = smov 8  }
   0xe   :  { %24 = dma.hbm_to_vmem [thread:$0]  %s428_s0, 256, %s19_s13, [#allocation3], %s379_s15, %s379_s15, %s380_s16  }
   0xf   :  { %s381_s19 = smov [#allocation5]  }
  0x10   :  { %s30_s20 = sshll.u32 %s381_s19, 4  ;;  %s31_s20 = int_to_ptr.vmem [resolvable:$true] %s30_s20 }
  0x11   :  { %s318_s21 = scalar_lea.vmem %s31_s20, 32  ;;  %p323_p6 = scmp.lt.s32.totalorder %s31_s20, %s31_s20 }
  0x12   :  { %p319_p5 = scmp.ne.s32.totalorder %s31_s20, %s318_s21  ;;  %p324_p7 = scmp.lt.s32.totalorder %s318_s21, %s318_s21 }
  0x14   :  { %p325_p8 = por %p324_p7, %p323_p6 }
  0x16   :  { %p326_p9 = pnand %p325_p8, %p319_p5 }
  0x18   :  { %329 = shalt.err (!%p326_p9)
}
  0x19   :  { %s382_s22 = smov 16   ;;  %s383_s23 = smov 1  }
  0x1a   :  { %36 = dma.hbm_to_vmem [thread:$0]  %s429_s1, 32, %s31_s20, [#allocation6], %s382_s22, %s382_s22, %s383_s23  }
  0x1b   :  { %370 = dma.done.wait [#allocation3], 256  }
  0x1c   :  { %371 = vsyncadd [#allocation3], 4294967040 }
  0x1d   :  { %372 = dma.done.wait [#allocation6], 32  }
  0x1e   :  { %373 = vsyncadd [#allocation6], 4294967264  ;;  %vm47_vm0 = vcmask 0   ;;  %v384_v0 = vmov 0.0   ;;  %vm385_vm1 = vmmov 0   ;;  %v49_v1 = vld [vmem:[#allocation2] sm:$0xff] }
  0x1f   :  { %48 = vst.msk [vmem:[#allocation8] sm:$0x1] %vm47_vm0, %v384_v0  ;;  %268 = vmatprep.subr.mxu0 %v384_v0  ;;  %273 = vmatprep.subr.mxu1 %v384_v0  ;;  %v50_v2 = vld [vmem:[#allocation2 + $0x8] sm:$0xff]  ;;  %vm53_vm2 = vcmask 261120   ;;  %v210_v3 = vmul.f32 %v49_v1, %v49_v1  ;;  %v51_v5 = vld [vmem:[#allocation5] sm:$0x1] }
  0x20   :  { %270 = vmatprep.mubr.msk.f32.mxu0 %vm385_vm1, %v384_v0  ;;  %275 = vmatprep.mubr.msk.f32.mxu1 %vm385_vm1, %v384_v0  ;;  %v211_v4 = vmul.f32 %v50_v2, %v50_v2  ;;  %v52_v6 = vld [vmem:[#allocation5 + $0x1] sm:$0x1]  ;;  %s386_s0 = smov [#allocation7]   ;;  %vm206_vm3 = vcmask 57344  }
  0x21   :  { %269 = vmatpush3.xpose.msk.msra.mxu0 %vm53_vm2, %v49_v1  ;;  %274 = vmatpush3.xpose.msk.msra.mxu1 %vm53_vm2, %v50_v2  ;;  %v212_v7 = vsel %vm53_vm2, %v210_v3, 0.0  ;;  %s233_s1 = sshll.u32 %s386_s0, 4  ;;  %s234_s1 = int_to_ptr.vmem [resolvable:$true] %s233_s1 }
  0x22   :  { %v213_v8 = vsel %vm53_vm2, %v211_v4, 0.0  ;;  %s330_s26 = scalar_lea.vmem %s234_s1, 32  ;;  %p335_p11 = scmp.lt.s32.totalorder %s234_s1, %s234_s1 }
  0x23   :  { %v214_v9 = vadd.f32 %v213_v8, %v212_v7  ;;  %p331_p10 = scmp.ne.s32.totalorder %s234_s1, %s330_s26  ;;  %p336_p12 = scmp.lt.s32.totalorder %s330_s26, %s330_s26 }
  0x24   :  { %271 = vmatmul.mubr.msk.f32.vlgmr.msra.gmra.mxu0 %vm53_vm2, %v51_v5  ;;  %276 = vmatmul.mubr.msk.f32.vlgmr.msra.gmra.mxu1 %vm53_vm2, %v52_v6 }
  0x25   :  { %215 = vadd.xlane.f32.xlu0 %v214_v9  ;;  %p337_p13 = por %p336_p12, %p335_p11 }
  0x27   :  { %p338_p0 = pnand %p337_p13, %p331_p10 }
  0xae   :  { %v216_v10 = vpop.xlane.xlu0 %215 }
  0xaf   :  { %v217_v11 = vrot.slane %v216_v10, 4 }
  0xb1   :  { %v218_v12 = vadd.f32 %v217_v11, %v216_v10 }
  0xb3   :  { %v219_v13 = vrot.slane %v218_v12, 2 }
  0xb5   :  { %v220_v14 = vadd.f32 %v219_v13, %v218_v12 }
  0xb7   :  { %v221_v15 = vrot.slane %v220_v14, 1 }
  0xb9   :  { %v222_v16 = vadd.f32 %v221_v15, %v220_v14 }
  0xbb   :  { %278 = vpush %v222_v16 }
  0xe4   :  { %v126_v17 = vpop.f32.mrf.mxu0  ;;  %v202_v18 = vpop.f32.mrf.mxu1 }
  0xe5   :  { %207 = vst.msk [vmem:[#allocation7] sm:$0x1] %vm206_vm3, %v126_v17  ;;  %208 = vst.msk [vmem:[#allocation7 + $0x1] sm:$0x1] %vm206_vm3, %v202_v18 }
  0xe6   :  { %v272_v19 = vpop.f32.mrf.mxu0  ;;  %v277_v20 = vpop.f32.mrf.mxu1 }
  0xe7   :  { %341 = shalt.err (!%p338_p0)
}
  0xe8   :  { %239 = dma.vmem_to_hbm [thread:$0]  %s234_s1, 32, %s430_s2, [#allocation4], %s382_s22, %s382_s22, %s383_s23   ;;  %v209_v21 = vld [vmem:[#allocation8] sm:$0x1] }
  0xe9   :  { %s387_s29 = smov [#allocation8]  }
  0xea   :  { %s246_s30 = sshll.u32 %s387_s29, 4  ;;  %s247_s30 = int_to_ptr.vmem [resolvable:$true] %s246_s30 }
  0xeb   :  { %s350_s5 = scalar_lea.vmem %s247_s30, 16  ;;  %s354_s6 = scalar_lea.vmem %s247_s30, 32 }
  0xec   :  { %s279_s4 = spop %278  ;;  %p351_p1 = scmp.ne.s32.totalorder %s247_s30, %s350_s5 }
  0xed   :  { %v224_v22 = vstv %s279_s4  ;;  %p355_p2 = scmp.lt.s32.totalorder %s247_s30, %s247_s30  ;;  %p356_p3 = scmp.lt.s32.totalorder %s354_s6, %s350_s5 }
  0xee   :  { %v225_v23 = vadd.f32 %v224_v22, %v209_v21 }
  0xef   :  { %p357_p4 = por %p356_p3, %p355_p2 }
  0xf0   :  { %227 = vst.msk [vmem:[#allocation8] sm:$0x1] %vm47_vm0, %v225_v23 }
  0xf1   :  { %p358_p5 = pnand %p357_p4, %p351_p1 }
  0xf3   :  { %361 = shalt.err (!%p358_p5)
}
  0xf4   :  { %249 = dma.vmem_to_hbm [thread:$0]  %s247_s30, 16, %s431_s3, [#allocation9]  }
  0xf5   :  { %374 = dma.done.wait [#allocation4], 32  }
  0xf6   :  { %375 = vsyncadd [#allocation4], 4294967264 }
  0xf7   :  { %376 = dma.done.wait [#allocation9], 16  }
  0xf8   :  { %377 = vsyncadd [#allocation9], 4294967280 }
  0xf9   :  { %256 = vsyncpa [#allocation3], 1 }
  0xfa   :  { %257 = vsyncpa [#allocation6], 1 }
  0xfb   :  { %258 = vsyncpa [#allocation4], 1 }
  0xfc   :  { %259 = vsyncpa [#allocation9], 1 }

</bundles_post_ra>
